<compile_context>
chip_gen: v6e
topology: v6e:2x2x1
jax: 0.10.0
libtpu: 0.0.40
codegen_flags: <defaults>
</compile_context>

<pallas_src>
import jax
import jax.numpy as jnp
import numpy as np
from jax.experimental import pallas as pl
from jax.experimental.pallas import tpu as pltpu


# ----------------------------------------------------------------------------
# Fused Pallas kernel (one row-tile of flattened [batch*node] rows per step)
# ----------------------------------------------------------------------------
def cg_embed_kernel(idx_ref, feats_ref, tcomb_ref, wfeat_ref, o_ref):
    """out[r, :] = ( onehot(label[r]) + onehot(k0[r]) + onehot(k1[r]) ) @ Tcomb
                 +   feats[r] @ Wfeat
       Tcomb / Wfeat already place each component at its final concat column.
       Out-of-range indices (-1) give an all-zero one-hot row => zero contribution.
    """
    f32 = jnp.float32
    rows = o_ref.shape[0]
    kt = tcomb_ref.shape[0]

    idx = idx_ref[...]                                             # [rows, 3] int32
    iota = jax.lax.broadcasted_iota(jnp.int32, (rows, kt), 1)      # [rows, 2L+2Ku]
    oh = ((idx[:, 0:1] == iota).astype(f32)
          + (idx[:, 1:2] == iota).astype(f32)
          + (idx[:, 2:3] == iota).astype(f32))

    o_ref[...] = (jnp.dot(oh, tcomb_ref[...], preferred_element_type=f32)
                  + jnp.dot(feats_ref[...], wfeat_ref[...],
                            preferred_element_type=f32))           # single store


# ----------------------------------------------------------------------------
# Wrapper: packs params / inputs, runs the fused kernel
# ----------------------------------------------------------------------------
def cg_node_embedding(params,
                      regular_node_inds=None, regular_node_shapes=None,
                      weighted_node_inds=None, weighted_node_shapes=None,
                      weighted_node_kernels=None, weighted_node_bias=None):
    reg_table = params["regular_embed"]     # [L, rsz]
    w_table = params["weighted_embed"]      # [L, wsz]
    k_table = params["kernel_embed"]        # [Ku, ksz // 2]
    W_shape, b_shape = params["shape_w"], params["shape_b"]   # [6, ssz], [ssz]
    W_bias, b_bias = params["bias_w"], params["bias_b"]       # [2, bsz], [bsz]

    L, rsz = reg_table.shape
    _, wsz = w_table.shape
    Ku, half_k = k_table.shape
    ksz = 2 * half_k
    n_shape, ssz = W_shape.shape
    n_bias_in, bsz = W_bias.shape
    out_sz = rsz + ssz
    assert out_sz == wsz + ssz + ksz + bsz
    Kf = 2 * n_shape + n_bias_in + 2        # packed dense-feature matmul K (= 16)
    f32 = jnp.float32

    def place(block, col0, ncols):
        # place a [k, ncols] block at columns [col0:col0+ncols] of width out_sz
        return jnp.pad(block.astype(f32), ((0, 0), (col0, out_sz - col0 - ncols)))

    # ---- packed lookup table (row offsets = index offsets, cols = final layout) --
    # weighted row layout: [label 0:wsz | shape | kernel(k0,k1) | bias]
    # regular  row layout: [label 0:rsz | shape]
    k0_off = wsz + ssz
    Tcomb = jnp.concatenate([
        place(w_table, 0, wsz),                      # rows [0, L)        weighted labels
        place(reg_table, 0, rsz),                    # rows [L, 2L)       regular labels
        place(k_table, k0_off, half_k),              # rows [2L, 2L+Ku)   kernel idx 0
        place(k_table, k0_off + half_k, half_k),     # rows [2L+Ku, ...)  kernel idx 1
    ], axis=0)                                       # [2L+2Ku, out]

    # ---- packed dense-feature weights (Linear layers + their biases) ------------
    row_wb = (jnp.zeros((1, out_sz), f32)
              .at[0, wsz:wsz + ssz].set(b_shape.astype(f32))
              .at[0, out_sz - bsz:].set(b_bias.astype(f32)))
    row_rb = jnp.zeros((1, out_sz), f32).at[0, rsz:].set(b_shape.astype(f32))
    Wfeat = jnp.concatenate([place(W_shape, wsz, ssz),          # weighted shape feats
                             place(W_bias, out_sz - bsz, bsz),  # weighted bias feats
                             place(W_shape, rsz, ssz),          # regular shape feats
                             row_wb, row_rb], axis=0)           # [Kf, out] const cols

    # ---- per-group packed node inputs (mirrors the torch None branches) ---------
    pieces = []
    if weighted_node_inds is not None:
        B, Nw = weighted_node_inds.shape
        lab = weighted_node_inds.astype(jnp.int32)[..., None]
        k0 = weighted_node_kernels[..., 0:1].astype(jnp.int32) + 2 * L
        k1 = weighted_node_kernels[..., 1:2].astype(jnp.int32) + 2 * L + Ku
        idx = jnp.concatenate([lab, k0, k1], axis=-1)
        feats = jnp.concatenate(
            [weighted_node_shapes.astype(f32), weighted_node_bias.astype(f32),
             jnp.zeros((B, Nw, n_shape), f32),
             jnp.ones((B, Nw, 1), f32), jnp.zeros((B, Nw, 1), f32)], axis=-1)
        pieces.append((idx, feats))
    if regular_node_inds is not None:
        B, Nr = regular_node_inds.shape
        lab = regular_node_inds.astype(jnp.int32)[..., None] + L
        neg = jnp.full((B, Nr, 2), -1, jnp.int32)   # -1 => zero one-hot contribution
        idx = jnp.concatenate([lab, neg], axis=-1)
        feats = jnp.concatenate(
            [jnp.zeros((B, Nr, n_shape + n_bias_in), f32),
             regular_node_shapes.astype(f32),
             jnp.zeros((B, Nr, 1), f32), jnp.ones((B, Nr, 1), f32)], axis=-1)
        pieces.append((idx, feats))
    if not pieces:
        raise ValueError("Input to CGNodeEmbedding cannot both be None")

    if len(pieces) == 1:
        idx, feats = pieces[0]
    else:  # torch: cat([weighted_embedding, regular_embedding], dim=1)
        idx = jnp.concatenate([pieces[0][0], pieces[1][0]], axis=1)
        feats = jnp.concatenate([pieces[0][1], pieces[1][1]], axis=1)

    B, N = idx.shape[:2]
    rows = B * N
    idx2 = idx.reshape(rows, 3)          # contiguous reshape: free layout plumbing
    feats2 = feats.reshape(rows, Kf)

    # Row tiling: every node row is independent -> one grid axis over row tiles.
    tile_r = rows if rows <= 1024 else 1024       # 1024 % 8 == 0; else full extent
    grid = (pl.cdiv(rows, tile_r),)
    kt = Tcomb.shape[0]

    out2 = pl.pallas_call(
        cg_embed_kernel,
        out_shape=jax.ShapeDtypeStruct((rows, out_sz), f32),
        grid=grid,
        in_specs=[
            pl.BlockSpec((tile_r, 3), lambda i: (i, 0)),
            pl.BlockSpec((tile_r, Kf), lambda i: (i, 0)),
            pl.BlockSpec((kt, out_sz), lambda i: (0, 0)),
            pl.BlockSpec((Kf, out_sz), lambda i: (0, 0)),
        ],
        out_specs=pl.BlockSpec((tile_r, out_sz), lambda i: (i, 0)),
        compiler_params=pltpu.CompilerParams(dimension_semantics=("parallel",)),
    )(idx2, feats2, Tcomb, Wfeat)

    return out2.reshape(B, N, out_sz)


# ----------------------------------------------------------------------------
# Pure-JAX reference (mirrors the torch forward exactly)
# ----------------------------------------------------------------------------
def _reference(params, ri, rs, wi, ws, wk, wb):
    HP = jax.lax.Precision.HIGHEST
    reg_e = params["regular_embed"][ri]
    shp_r = jnp.matmul(rs, params["shape_w"], precision=HP) + params["shape_b"]
    regular = jnp.concatenate([reg_e, shp_r], axis=-1)

    w_e = params["weighted_embed"][wi]
    k_e = params["kernel_embed"][wk]
    k_e = k_e.reshape(k_e.shape[0], k_e.shape[1], -1)
    shp_w = jnp.matmul(ws, params["shape_w"], precision=HP) + params["shape_b"]
    b_e = jnp.matmul(wb, params["bias_w"], precision=HP) + params["bias_b"]
    weighted = jnp.concatenate([w_e, shp_w, k_e, b_e], axis=-1)
    return jnp.concatenate([weighted, regular], axis=1)


# ----------------------------------------------------------------------------
if __name__ == "__main__":
    # module hyper-parameters
    L = 16            # n_unique_labels
    OUT = 32          # out_embed_size
    SSZ = 8           # shape_embed_size
    KSZ = 8           # kernel_embed_size (even)
    BSZ = 2           # bias_embed_size
    KU = 8            # n_unique_kernels
    NSV = 6           # n_shape_vals
    RSZ = OUT - SSZ                       # regular embedding table width = 24
    WSZ = OUT - SSZ - KSZ - BSZ           # weighted embedding table width = 14

    B, NR, NW = 2, 8, 8

    key = jax.random.PRNGKey(0)
    ks = jax.random.split(key, 14)
    params = {
        "regular_embed": 0.1 * jax.random.normal(ks[0], (L, RSZ), jnp.float32),
        "weighted_embed": 0.1 * jax.random.normal(ks[1], (L, WSZ), jnp.float32),
        "kernel_embed": 0.1 * jax.random.normal(ks[2], (KU, KSZ // 2), jnp.float32),
        "shape_w": 0.1 * jax.random.normal(ks[3], (NSV, SSZ), jnp.float32),
        "shape_b": 0.1 * jax.random.normal(ks[4], (SSZ,), jnp.float32),
        "bias_w": 0.1 * jax.random.normal(ks[5], (2, BSZ), jnp.float32),
        "bias_b": 0.1 * jax.random.normal(ks[6], (BSZ,), jnp.float32),
    }

    regular_node_inds = jax.random.randint(ks[7], (B, NR), 0, L, jnp.int32)
    regular_node_shapes = jax.random.uniform(ks[8], (B, NR, NSV), jnp.float32)
    weighted_node_inds = jax.random.randint(ks[9], (B, NW), 0, L, jnp.int32)
    weighted_node_shapes = jax.random.uniform(ks[10], (B, NW, NSV), jnp.float32)
    weighted_node_kernels = jax.random.randint(ks[11], (B, NW, 2), 0, KU, jnp.int32)
    weighted_node_bias = jax.random.uniform(ks[12], (B, NW, 2), jnp.float32)

    fwd = jax.jit(cg_node_embedding)
    node_emb = fwd(params,
                   regular_node_inds, regular_node_shapes,
                   weighted_node_inds, weighted_node_shapes,
                   weighted_node_kernels, weighted_node_bias)
    jax.block_until_ready(node_emb)
    assert node_emb.shape == (B, NW + NR, OUT)

    ref = _reference(params, regular_node_inds, regular_node_shapes,
                     weighted_node_inds, weighted_node_shapes,
                     weighted_node_kernels, weighted_node_bias)
    np.testing.assert_allclose(np.asarray(node_emb), np.asarray(ref),
                               rtol=1e-3, atol=1e-3)

    # torch None-branches: regular-only / weighted-only paths use the same kernel.
    reg_only = cg_node_embedding(params, regular_node_inds, regular_node_shapes,
                                 None, None, None, None)
    np.testing.assert_allclose(np.asarray(reg_only), np.asarray(ref[:, NW:, :]),
                               rtol=1e-3, atol=1e-3)
    w_only = cg_node_embedding(params, None, None,
                               weighted_node_inds, weighted_node_shapes,
                               weighted_node_kernels, weighted_node_bias)
    np.testing.assert_allclose(np.asarray(w_only), np.asarray(ref[:, :NW, :]),
                               rtol=1e-3, atol=1e-3)

    print("KERNEL_OK")
</pallas_src>

<mosaic_0001>
module attributes {stable_mosaic.version = 11 : i64} {
  func.func @cg_embed_kernel(%arg0: i32, %arg1: memref<32x3xi32, #tpu.memory_space<vmem>>, %arg2: memref<32x16xf32, #tpu.memory_space<vmem>>, %arg3: memref<48x32xf32, #tpu.memory_space<vmem>>, %arg4: memref<16x32xf32, #tpu.memory_space<vmem>>, %arg5: memref<32x32xf32, #tpu.memory_space<vmem>>) attributes {dimension_semantics = [#tpu.dimension_semantics<parallel>], iteration_bounds = array<i64: 1>, scalar_prefetch = 0 : i64, scratch_operands = 0 : i64, tpu.core_type = #tpu.core_type<tc>, window_params = [{transform_indices = @transform_0, window_bounds = array<i64: 32, 3>}, {transform_indices = @transform_1, window_bounds = array<i64: 32, 16>}, {pipeline_mode = #tpu.pipeline_mode<synchronous>, transform_indices = @transform_2, window_bounds = array<i64: 48, 32>}, {pipeline_mode = #tpu.pipeline_mode<synchronous>, transform_indices = @transform_3, window_bounds = array<i64: 16, 32>}, {transform_indices = @transform_4, window_bounds = array<i64: 32, 32>}]} {
    %c0 = arith.constant 0 : index
    %c0_0 = arith.constant 0 : index
    %0 = vector.load %arg1[%c0, %c0_0] : memref<32x3xi32, #tpu.memory_space<vmem>>, vector<32x3xi32>
    %1 = tpu.iota {dimensions = array<i32: 1>} : vector<32x48xi32>
    %2 = vector.extract_strided_slice %0 {offsets = [0, 0], sizes = [32, 1], strides = [1, 1]} : vector<32x3xi32> to vector<32x1xi32>
    %3 = vector.broadcast %2 : vector<32x1xi32> to vector<32x48xi32>
    %4 = arith.cmpi eq, %3, %1 : vector<32x48xi32>
    %5 = arith.extui %4 : vector<32x48xi1> to vector<32x48xi32>
    %6 = arith.sitofp %5 : vector<32x48xi32> to vector<32x48xf32>
    %7 = vector.extract_strided_slice %0 {offsets = [0, 1], sizes = [32, 1], strides = [1, 1]} : vector<32x3xi32> to vector<32x1xi32>
    %8 = vector.broadcast %7 : vector<32x1xi32> to vector<32x48xi32>
    %9 = arith.cmpi eq, %8, %1 : vector<32x48xi32>
    %10 = arith.extui %9 : vector<32x48xi1> to vector<32x48xi32>
    %11 = arith.sitofp %10 : vector<32x48xi32> to vector<32x48xf32>
    %12 = arith.addf %6, %11 : vector<32x48xf32>
    %13 = vector.extract_strided_slice %0 {offsets = [0, 2], sizes = [32, 1], strides = [1, 1]} : vector<32x3xi32> to vector<32x1xi32>
    %14 = vector.broadcast %13 : vector<32x1xi32> to vector<32x48xi32>
    %15 = arith.cmpi eq, %14, %1 : vector<32x48xi32>
    %16 = arith.extui %15 : vector<32x48xi1> to vector<32x48xi32>
    %17 = arith.sitofp %16 : vector<32x48xi32> to vector<32x48xf32>
    %18 = arith.addf %12, %17 : vector<32x48xf32>
    %c0_1 = arith.constant 0 : index
    %c0_2 = arith.constant 0 : index
    %19 = vector.load %arg3[%c0_1, %c0_2] : memref<48x32xf32, #tpu.memory_space<vmem>>, vector<48x32xf32>
    %cst = arith.constant dense<0.000000e+00> : vector<32x32xf32>
    %20 = tpu.matmul %18, %19, %cst {dimension_numbers = #tpu.dot_dimension_numbers<[1], [0], [0], [1], [0, 0, 1, 1], [], []>} : vector<32x48xf32>, vector<48x32xf32>, vector<32x32xf32> -> vector<32x32xf32>
    %c0_3 = arith.constant 0 : index
    %c0_4 = arith.constant 0 : index
    %21 = vector.load %arg2[%c0_3, %c0_4] : memref<32x16xf32, #tpu.memory_space<vmem>>, vector<32x16xf32>
    %c0_5 = arith.constant 0 : index
    %c0_6 = arith.constant 0 : index
    %22 = vector.load %arg4[%c0_5, %c0_6] : memref<16x32xf32, #tpu.memory_space<vmem>>, vector<16x32xf32>
    %cst_7 = arith.constant dense<0.000000e+00> : vector<32x32xf32>
    %23 = tpu.matmul %21, %22, %cst_7 {dimension_numbers = #tpu.dot_dimension_numbers<[1], [0], [0], [1], [0, 0, 1, 1], [], []>} : vector<32x16xf32>, vector<16x32xf32>, vector<32x32xf32> -> vector<32x32xf32>
    %24 = arith.addf %20, %23 : vector<32x32xf32>
    %c0_8 = arith.constant 0 : index
    %c0_9 = arith.constant 0 : index
    %25 = vector.load %arg5[%c0_8, %c0_9] : memref<32x32xf32, #tpu.memory_space<vmem>>, vector<32x32xf32>
    tpu.vector_store %arg5[%c0_8, %c0_9], %24 {strides = array<i32>} : memref<32x32xf32, #tpu.memory_space<vmem>>, vector<32x32xf32>,
    return
  }
  func.func @transform_0(%arg0: i32) -> (i32, i32) {
    %c0_i32 = arith.constant 0 : i32
    %c0_i32_0 = arith.constant 0 : i32
    return %arg0, %c0_i32 : i32, i32
  }
  func.func @transform_1(%arg0: i32) -> (i32, i32) {
    %c0_i32 = arith.constant 0 : i32
    %c0_i32_0 = arith.constant 0 : i32
    return %arg0, %c0_i32 : i32, i32
  }
  func.func @transform_2(%arg0: i32) -> (i32, i32) {
    %c0_i32 = arith.constant 0 : i32
    %c0_i32_0 = arith.constant 0 : i32
    %c0_i32_1 = arith.constant 0 : i32
    return %c0_i32, %c0_i32_0 : i32, i32
  }
  func.func @transform_3(%arg0: i32) -> (i32, i32) {
    %c0_i32 = arith.constant 0 : i32
    %c0_i32_0 = arith.constant 0 : i32
    %c0_i32_1 = arith.constant 0 : i32
    return %c0_i32, %c0_i32_0 : i32, i32
  }
  func.func @transform_4(%arg0: i32) -> (i32, i32) {
    %c0_i32 = arith.constant 0 : i32
    %c0_i32_0 = arith.constant 0 : i32
    return %arg0, %c0_i32 : i32, i32
  }
}

</mosaic_0001>

<bundles_post_ra>
// kernel: cg_node_embedding.1
= control target key start
LH: loop header
LB: loop body
LE: loop exit
PB: predicated region body
PF: predicated region fallthrough
CT: control target
= control target key end

     0   :  { %v435_v2 = vmov 1   ;;  %v436_v3 = vmov 0   ;;  %s530_s0 = inlined_call_operand.vmem [shape: s32[32,3], index: 0, kind: input, shape index: {}]   ;;  %s531_s1 = inlined_call_operand.vmem [shape: f32[32,16], index: 1, kind: input, shape index: {}]   ;;  %s532_s2 = inlined_call_operand.vmem [shape: f32[48,32], index: 2, kind: input, shape index: {}]   ;;  %s533_s3 = inlined_call_operand.vmem [shape: f32[16,32], index: 3, kind: input, shape index: {}]   ;;  %s534_s4 = inlined_call_operand.hbm [shape: f32[32,32], index: 4, kind: output, shape index: {}]  }
   0x1   :  { %v19_v0 = vld [vmem:[%s530_s0 + $0x8] sm:$0xff]  ;;  %v18_v1 = vld [vmem:[%s530_s0] sm:$0xff]  ;;  %404 = vset.pattern.permute.xlu0 %v435_v2  ;;  %406 = vset.pattern.permute.xlu1 %v436_v3 }
   0x2   :  { %9 = vsyncpa [#allocation3], 0  ;;  %28 = vperm.xlu1 %406, %v19_v0   ;;  %49 = vperm.xlu0 %404, %v18_v1   ;;  %v109_v4 = vld [vmem:[%s532_s2 + $0x28] sm:$0xff]  ;;  %v108_v5 = vld [vmem:[%s532_s2 + $0x20] sm:$0xff]  ;;  %v437_v9 = vmov 2   ;;  %vm116_vm0 = vcmask 130048   ;;  %v22_v19 = vlaneseq }
   0x3   :  { %379 = vmatprep.subr.mxu1 %v109_v4  ;;  %v107_v6 = vld [vmem:[%s532_s2 + $0x18] sm:$0xff]  ;;  %v106_v8 = vld [vmem:[%s532_s2 + $0x10] sm:$0xff]  ;;  %v115_v10 = vld [vmem:[%s533_s3 + $0x8] sm:$0xff]  ;;  %v438_v25 = vmov 0.0   ;;  %vm214_vm6 = vcmask 392192   ;;  %vm312_vm14 = vcmask 261120  }
   0x4   :  { %380 = vmatpush3.msra.mxu1 %v109_v4  ;;  %v21_v7 = vld [vmem:[%s530_s0 + $0x18] sm:$0xff]  ;;  %v105_v11 = vld [vmem:[%s532_s2 + $0x8] sm:$0xff]  ;;  %369 = vmatprep.subr.mxu0 %v115_v10  ;;  %v20_v12 = vld [vmem:[%s530_s0 + $0x10] sm:$0xff]  ;;  %v23_v22 = vand.u32 127, %v22_v19 }
   0x5   :  { %381 = vmatprep.subr.mxu1 %v108_v5  ;;  %370 = vmatpush3.msra.mxu0 %v115_v10  ;;  %v114_v13 = vld [vmem:[%s533_s3] sm:$0xff]  ;;  %v111_v16 = vld [vmem:[%s531_s1 + $0x8] sm:$0xff]  ;;  %v112_v17 = vld [vmem:[%s531_s1 + $0x10] sm:$0xff] }
   0x6   :  { %407 = vset.pattern.permute.xlu1 %v435_v2  ;;  %405 = vset.pattern.permute.xlu0 %v436_v3  ;;  %v104_v14 = vld [vmem:[%s532_s2] sm:$0xff]  ;;  %v113_v18 = vld [vmem:[%s531_s1 + $0x18] sm:$0xff] }
   0x7   :  { %52 = vperm.xlu1 %407, %v19_v0   ;;  %25 = vperm.xlu0 %405, %v18_v1   ;;  %v110_v15 = vld [vmem:[%s531_s1] sm:$0xff]  ;;  %s439_s1 = smov [#allocation2]  }
   0x8   :  { %382 = vmatpush3.msra.mxu1 %v108_v5  ;;  %371 = vmatprep.subr.mxu0 %v114_v13  ;;  %s322_s18 = sshll.u32 %s439_s1, 4  ;;  %s323_s18 = int_to_ptr.vmem [resolvable:$true] %s322_s18 }
   0x9   :  { %383 = vmatprep.subr.mxu1 %v107_v6  ;;  %372 = vmatpush3.msra.mxu0 %v114_v13  ;;  %s413_s19 = scalar_lea.vmem %s323_s18, 512  ;;  %p418_p1 = scmp.lt.s32.totalorder %s323_s18, %s323_s18 }
   0xa   :  { %384 = vmatpush3.msra.mxu1 %v107_v6  ;;  %373 = vmatprep.mubr.msk.f32.mxu0 %vm116_vm0, %v110_v15  ;;  %p414_p0 = scmp.ne.s32.totalorder %s323_s18, %s413_s19  ;;  %p419_p2 = scmp.lt.s32.totalorder %s413_s19, %s413_s19 }
   0xb   :  { %408 = vset.pattern.permute.xlu1 %v437_v9  ;;  %34 = vperm.xlu0 %405, %v21_v7  }
   0xc   :  { %77 = vperm.xlu1 %408, %v18_v1   ;;  %385 = vmatprep.subr.mxu1 %v106_v8  ;;  %p420_p3 = por %p419_p2, %p418_p1 }
   0xd   :  { %386 = vmatpush3.msra.mxu1 %v106_v8  ;;  %374 = vmatmul.mubr.msk.f32.vlgmr.msra.gmra.mxu0 %vm116_vm0, %v111_v16 }
   0xe   :  { %387 = vmatprep.subr.mxu1 %v105_v11  ;;  %376 = vmatprep.mubr.msk.f32.mxu0 %vm116_vm0, %v112_v17  ;;  %p421_p4 = pnand %p420_p3, %p414_p0 }
   0xf   :  { %411 = vset.pattern.permute.xlu0 %v437_v9  ;;  %388 = vmatpush3.msra.mxu1 %v105_v11 }
  0x10   :  { %409 = vset.pattern.permute.xlu1 %v436_v3  ;;  %80 = vperm.xlu0 %411, %v19_v0  }
  0x11   :  { %31 = vperm.xlu1 %409, %v20_v12   ;;  %389 = vmatprep.subr.mxu1 %v104_v14 }
  0x12   :  { %390 = vmatpush3.msra.mxu1 %v104_v14  ;;  %377 = vmatmul.mubr.msk.f32.gmra.mxu0 %vm116_vm0, %v113_v18 }
  0x14   :  { %86 = vperm.xlu0 %411, %v21_v7  }
  0x15   :  { %410 = vset.pattern.permute.xlu1 %v435_v2 }
  0x16   :  { %55 = vperm.xlu1 %410, %v20_v12  }
  0x1a   :  { %58 = vperm.xlu1 %410, %v21_v7  }
  0x1e   :  { %412 = vset.pattern.permute.xlu1 %v437_v9 }
  0x1f   :  { %83 = vperm.xlu1 %412, %v20_v12  }
  0x7d   :  { %v29_v20 = vpop.permute.xlu1 %28  ;;  %v50_v21 = vpop.permute.xlu0 %49 }
  0x7e   :  { %vm60_vm1 = vcmp.eq.s32.totalorder %v50_v21, %v23_v22  ;;  %vm37_vm4 = vcmp.eq.s32.totalorder %v29_v20, %v23_v22 }
  0x7f   :  { %v337_v26 = vsel %vm60_vm1, 1.0, %v438_v25  ;;  %v334_v34 = vsel %vm37_vm4, 1.0, %v438_v25 }
  0x82   :  { %v53_v23 = vpop.permute.xlu1 %52  ;;  %v26_v24 = vpop.permute.xlu0 %25 }
  0x83   :  { %vm36_vm2 = vcmp.eq.s32.totalorder %v26_v24, %v23_v22  ;;  %vm61_vm3 = vcmp.eq.s32.totalorder %v53_v23, %v23_v22 }
  0x84   :  { %v333_v27 = vsel %vm36_vm2, 1.0, %v438_v25  ;;  %v338_v31 = vsel %vm61_vm3, 1.0, %v438_v25 }
  0x85   :  { %v72_v28 = vadd.f32 %v337_v26, %v333_v27  ;;  %v73_v36 = vadd.f32 %v338_v31, %v334_v34 }
  0x86   :  { %v35_v29 = vpop.permute.xlu0 %34 }
  0x87   :  { %v78_v30 = vpop.permute.xlu1 %77  ;;  %vm39_vm9 = vcmp.eq.s32.totalorder %v35_v29, %v23_v22 }
  0x88   :  { %vm88_vm5 = vcmp.eq.s32.totalorder %v78_v30, %v23_v22  ;;  %v336_v45 = vsel %vm39_vm9, 1.0, %v438_v25 }
  0x89   :  { %v341_v32 = vsel %vm88_vm5, 1.0, %v438_v25 }
  0x8a   :  { %v100_v33 = vadd.f32 %v341_v32, %v72_v28 }
  0x8b   :  { %v81_v35 = vpop.permute.xlu0 %80 }
  0x8c   :  { %vm89_vm7 = vcmp.eq.s32.totalorder %v81_v35, %v23_v22  ;;  %v32_v37 = vpop.permute.xlu1 %31  ;;  %391 = vmatprep.mubr.msk.f32.mxu1 %vm214_vm6, %v100_v33 }
  0x8d   :  { %v342_v38 = vsel %vm89_vm7, 1.0, %v438_v25  ;;  %vm38_vm11 = vcmp.eq.s32.totalorder %v32_v37, %v23_v22 }
  0x8e   :  { %v101_v39 = vadd.f32 %v342_v38, %v73_v36  ;;  %v335_v46 = vsel %vm38_vm11, 1.0, %v438_v25 }
  0x8f   :  { %v87_v42 = vpop.permute.xlu0 %86 }
  0x90   :  { %392 = vmatmul.mubr.msk.f32.vlgmr.msra.gmra.mxu1 %vm214_vm6, %v101_v39  ;;  %vm91_vm12 = vcmp.eq.s32.totalorder %v87_v42, %v23_v22 }
  0x91   :  { %v56_v40 = vpop.permute.xlu1 %55  ;;  %v344_v50 = vsel %vm91_vm12, 1.0, %v438_v25 }
  0x92   :  { %vm62_vm8 = vcmp.eq.s32.totalorder %v56_v40, %v23_v22 }
  0x93   :  { %v339_v44 = vsel %vm62_vm8, 1.0, %v438_v25 }
  0x94   :  { %v74_v49 = vadd.f32 %v339_v44, %v335_v46 }
  0x95   :  { %v59_v41 = vpop.permute.xlu1 %58 }
  0x96   :  { %vm63_vm10 = vcmp.eq.s32.totalorder %v59_v41, %v23_v22 }
  0x97   :  { %v340_v43 = vsel %vm63_vm10, 1.0, %v438_v25 }
  0x98   :  { %v75_v47 = vadd.f32 %v340_v43, %v336_v45 }
  0x9a   :  { %v84_v48 = vpop.permute.xlu1 %83  ;;  %v103_v53 = vadd.f32 %v344_v50, %v75_v47 }
  0x9b   :  { %vm90_vm13 = vcmp.eq.s32.totalorder %v84_v48, %v23_v22 }
  0x9c   :  { %v343_v51 = vsel %vm90_vm13, 1.0, %v438_v25 }
  0x9d   :  { %v102_v52 = vadd.f32 %v343_v51, %v74_v49 }
  0x9f   :  { %394 = vmatprep.mubr.msk.f32.mxu1 %vm214_vm6, %v102_v52 }
  0xa0   :  { %395 = vmatmul.mubr.msk.f32.gmra.mxu1 %vm214_vm6, %v103_v53 }
  0xcd   :  { %v375_v54 = vpop.f32.mrf.mxu0 }
  0xcf   :  { %v195_v56 = vpop.f32.mrf.mxu0 }
  0xd2   :  { %v378_v60 = vpop.f32.mrf.mxu0 }
  0xd4   :  { %v205_v63 = vpop.f32.mrf.mxu0 }
 0x150   :  { %v393_v55 = vpop.f32.mrf.mxu1 }
 0x151   :  { %v299_v57 = vadd.f32 %v393_v55, %v375_v54 }
 0x152   :  { %v293_v58 = vpop.f32.mrf.mxu1 }
 0x153   :  { %314 = vst.msk [vmem:[#allocation2 + $0x8] sm:$0xff] %vm312_vm14, %v299_v57  ;;  %v294_v59 = vadd.f32 %v293_v58, %v195_v56 }
 0x155   :  { %313 = vst.msk [vmem:[#allocation2] sm:$0xff] %vm312_vm14, %v294_v59 }
 0x160   :  { %v396_v61 = vpop.f32.mrf.mxu1 }
 0x161   :  { %v309_v62 = vadd.f32 %v396_v61, %v378_v60 }
 0x162   :  { %v303_v0 = vpop.f32.mrf.mxu1 }
 0x163   :  { %316 = vst.msk [vmem:[#allocation2 + $0x18] sm:$0xff] %vm312_vm14, %v309_v62  ;;  %v304_v1 = vadd.f32 %v303_v0, %v205_v63 }
 0x165   :  { %315 = vst.msk [vmem:[#allocation2 + $0x10] sm:$0xff] %vm312_vm14, %v304_v1 }
 0x166   :  { %424 = shalt.err (!%p421_p4)
}
 0x167   :  { %s440_s20 = smov 128   ;;  %s441_s21 = smov 8  }
 0x168   :  { %328 = dma.vmem_to_hbm [thread:$0]  %s323_s18, 512, %s534_s4, [#allocation3], %s440_s20, %s440_s20, %s441_s21  }
 0x169   :  { %433 = dma.done.wait [#allocation3], 512  }
 0x16a   :  { %434 = vsyncadd [#allocation3], 4294966784 }
 0x16b   :  { %332 = vsyncpa [#allocation3], 1 }

</bundles_post_ra>
